<compile_context>
chip_gen: v5e
topology: v5e:2x2
jax: 0.10.0
libtpu: 0.0.40
codegen_flags: <defaults>
</compile_context>

<pallas_src>
import jax
import jax.numpy as jnp
from jax.experimental import pallas as pl
from jax.experimental.pallas import tpu as pltpu  # noqa: F401  (TPU backend)


def _identity_kernel(x_ref, o_ref):
    # Output is aliased to the input and both refs live in ANY (HBM) memory
    # space: nothing to read or write.  True no-op body.
    del x_ref, o_ref


def _passthrough(x):
    """Identity on `x` via an aliased, DMA-free Pallas call."""
    if x.size == 0:  # degenerate case: nothing to alias / launch
        return x
    return pl.pallas_call(
        _identity_kernel,
        out_shape=jax.ShapeDtypeStruct(x.shape, x.dtype),
        in_specs=[pl.BlockSpec(memory_space=pl.ANY)],   # raw HBM ref, no tiling
        out_specs=pl.BlockSpec(memory_space=pl.ANY),    # raw HBM ref, no tiling
        input_output_aliases={0: 0},                    # output buffer == input buffer
        cost_estimate=pl.CostEstimate(
            flops=0, transcendentals=0, bytes_accessed=0
        ),
    )(x)


# Default path: caller keeps ownership of `x` (XLA inserts one defensive copy
# because the aliased operand is not donated).
_passthrough_jit = jax.jit(_passthrough)
# Zero-copy path for callers that can donate `x`: the result aliases the very
# same HBM buffer — no copy, no DMA, launch overhead only.
_passthrough_donated = jax.jit(_passthrough, donate_argnums=0)


def identity_activation(x, edge_index=None, edge_attr=None, batch=None,
                        time=None, *, donate_x=False):
    """Pallas equivalent of IdentityActivation.forward: returns (x, -1).

    edge_index / edge_attr / batch / time are accepted but unused, exactly as
    in the reference PyTorch module.  Set donate_x=True when the caller no
    longer needs its copy of `x` to get the fully zero-copy path.
    """
    fn = _passthrough_donated if donate_x else _passthrough_jit
    return fn(x), -1


if __name__ == "__main__":
    key = jax.random.PRNGKey(0)
    k_x, k_ea = jax.random.split(key)

    # Small graph-shaped inputs: 16 nodes with 32 features, 24 edges.
    num_nodes, num_feats, num_edges = 16, 32, 24
    x = jax.random.normal(k_x, (num_nodes, num_feats), dtype=jnp.float32)
    edge_index = jnp.zeros((2, num_edges), dtype=jnp.int32)
    edge_attr = jax.random.normal(k_ea, (num_edges, 8), dtype=jnp.float32)
    batch = jnp.zeros((num_nodes,), dtype=jnp.int32)
    time = jnp.float32(0.5)

    # Default (non-donating) path: caller's x stays valid afterwards.
    out, flag = identity_activation(x, edge_index, edge_attr, batch, time)
    out = jax.block_until_ready(out)
    assert out.shape == x.shape and out.dtype == x.dtype
    assert bool(jnp.all(out == x))
    assert flag == -1

    # Donating (zero-copy) path on a fresh array; compare against a recomputed
    # reference since the donated buffer may no longer be readable.
    x2 = jax.block_until_ready(x + 1.0)
    out2, flag2 = identity_activation(x2, edge_index, edge_attr, batch, time,
                                      donate_x=True)
    out2 = jax.block_until_ready(out2)
    assert out2.shape == x.shape and out2.dtype == x.dtype
    assert bool(jnp.all(out2 == x + 1.0))
    assert flag2 == -1

    print("KERNEL_OK")
</pallas_src>

<mosaic_0001>
module attributes {stable_mosaic.version = 11 : i64} {
  func.func @_identity_kernel(%arg0: memref<16x32xf32, #tpu.memory_space<any>>, %arg1: memref<16x32xf32, #tpu.memory_space<any>>) attributes {dimension_semantics = [], scalar_prefetch = 0 : i64, scratch_operands = 0 : i64, tpu.core_type = #tpu.core_type<tc>} {
    return
  }
}

</mosaic_0001>

<bundles_post_ra>
// kernel: _passthrough.1
= control target key start
LH: loop header
LB: loop body
LE: loop exit
PB: predicated region body
PF: predicated region fallthrough
CT: control target
= control target key end

     0   :  { %s16_s0 = inlined_call_operand.hbm [shape: f32[16,32], index: 0, kind: input, shape index: {}, may-alias: {0,1}]   ;;  %s17_s1 = inlined_call_operand.hbm [shape: f32[16,32], index: 1, kind: output, shape index: {}, may-alias: {0,1}]  }

</bundles_post_ra>
